<compile_context>
chip_gen: v7x
topology: tpu7x:2x2x1
jax: 0.10.0
libtpu: 0.0.40
codegen_flags: <defaults>
</compile_context>

<pallas_src>
import functools
import math

import jax
import jax.numpy as jnp
from jax import lax
from jax.experimental import pallas as pl
from jax.experimental.pallas import tpu as pltpu

EPS = 1e-13  # matches the PyTorch reference module exactly


# --------------------------------------------------------------------------
# Pallas kernel
# --------------------------------------------------------------------------
def _dsconv_kernel(x_ref, dw_ref, alpha_ref, gamma_ref, beta_ref, pw_ref,
                   o_ref, *, shifts, norm_type):
    """Fused depthwise conv (+chomp) -> PReLU -> norm -> pointwise conv.

    One batch element per grid step: x_ref block is [1, C, T]
    (C -> sublanes, T -> lanes). Weights are tiny full-spec VMEM residents;
    the scalar PReLU alpha is read from SMEM.
    """
    x = x_ref[0].astype(jnp.float32)                       # [C, T]
    T = x.shape[1]

    # ---- dilated depthwise conv, static tap unroll -------------------------
    #   out[c, t] = sum_j dw[j, c] * x[c, t - shifts[j]]   (zeros outside [0,T))
    col = lax.broadcasted_iota(jnp.int32, x.shape, 1)      # hoisted out of loop
    acc = jnp.zeros_like(x)
    for j, s in enumerate(shifts):                          # k taps, static
        if abs(s) >= T:
            continue                                        # tap fully in the pad
        w_j = dw_ref[j].astype(jnp.float32)                 # [C, 1] column
        if s == 0:
            tap = x
        elif s > 0:                                         # value from the past
            tap = jnp.where(col >= s, pltpu.roll(x, s, axis=1), 0.0)
        else:                                               # value from the future
            r = -s
            tap = jnp.where(col < T - r,
                            pltpu.roll(x, (T - r) % T, axis=1), 0.0)
        acc = acc + w_j * tap
    y = acc

    # ---- PReLU (single scalar alpha, from SMEM) -----------------------------
    a = alpha_ref[0]
    y = jnp.where(y >= 0.0, y, a * y)

    # ---- gLN / cLN ----------------------------------------------------------
    gamma = gamma_ref[...].astype(jnp.float32)              # [C, 1]
    beta = beta_ref[...].astype(jnp.float32)                # [C, 1]
    if norm_type == "gLN":
        mu = jnp.mean(y, axis=(0, 1), keepdims=True)
        var = jnp.mean((y - mu) ** 2, axis=(0, 1), keepdims=True)
    else:  # cLN (per-time, over channels; unbiased=False)
        mu = jnp.mean(y, axis=0, keepdims=True)
        var = jnp.mean((y - mu) ** 2, axis=0, keepdims=True)
    y = gamma * (y - mu) * lax.rsqrt(var + EPS) + beta

    # ---- pointwise 1x1 conv (MXU matmul, lane-dense N = T) ------------------
    out = jnp.dot(pw_ref[...].astype(jnp.float32), y,
                  preferred_element_type=jnp.float32)       # [Cout, T]
    o_ref[0] = out.astype(o_ref.dtype)


# --------------------------------------------------------------------------
# Wrapper
# --------------------------------------------------------------------------
def depthwise_separable_conv(x, params, *, kernel_size, stride, padding,
                             dilation, norm_type="gLN", causal=False):
    """Forward of DepthwiseSeparableConv. x: [M, C, T] -> [M, Cout, T]."""
    if stride != 1:
        raise NotImplementedError("stride != 1 is not supported")
    if norm_type not in ("gLN", "cLN"):
        # TODO(synk): BatchNorm1d norm_type needs cross-batch running stats.
        raise NotImplementedError(norm_type)

    M, C, T = x.shape
    Cout = params["pw"].shape[0]

    l_conv = T + 2 * padding - dilation * (kernel_size - 1)
    l_out = l_conv - padding if causal else l_conv
    if l_out != T:
        raise NotImplementedError(
            "kernel assumes length-preserving configs "
            "(causal chomp, or symmetric 'same' padding)")

    # Tap j of the (cross-correlation) conv reads x[t - shifts[j]].
    shifts = tuple(padding - j * dilation for j in range(kernel_size))
    kernel = functools.partial(_dsconv_kernel, shifts=shifts,
                               norm_type=norm_type)

    def full(arr):
        return pl.BlockSpec(arr.shape, lambda m, _n=arr.ndim: (0,) * _n)

    return pl.pallas_call(
        kernel,
        out_shape=jax.ShapeDtypeStruct((M, Cout, T), x.dtype),
        grid=(M,),
        in_specs=[
            pl.BlockSpec((1, C, T), lambda m: (m, 0, 0)),
            full(params["dw"]),                                      # [k, C, 1]
            pl.BlockSpec(memory_space=pltpu.MemorySpace.SMEM),       # alpha (1,)
            full(params["gamma"]),                                   # [C, 1]
            full(params["beta"]),                                    # [C, 1]
            full(params["pw"]),                                      # [Cout, C]
        ],
        out_specs=pl.BlockSpec((1, Cout, T), lambda m: (m, 0, 0)),
        compiler_params=pltpu.CompilerParams(
            dimension_semantics=("parallel",)),
    )(x, params["dw"], params["alpha"], params["gamma"], params["beta"],
      params["pw"])


# --------------------------------------------------------------------------
# Pure-JAX reference (mirrors the PyTorch module) + parameter init
# --------------------------------------------------------------------------
def _reference(x, params, *, kernel_size, padding, dilation, norm_type, causal):
    M, C, T = x.shape
    w = jnp.transpose(params["dw"][:, :, 0], (1, 0))[:, None, :]   # [C, 1, k]
    y = lax.conv_general_dilated(
        x, w, window_strides=(1,), padding=[(padding, padding)],
        rhs_dilation=(dilation,), dimension_numbers=("NCH", "OIH", "NCH"),
        feature_group_count=C)
    if causal and padding > 0:
        y = y[:, :, :-padding]                                       # Chomp1d
    a = params["alpha"][0]
    y = jnp.where(y >= 0, y, a * y)                                  # PReLU
    if norm_type == "gLN":
        mu = jnp.mean(y, axis=(1, 2), keepdims=True)
        var = jnp.mean((y - mu) ** 2, axis=(1, 2), keepdims=True)
    else:  # cLN
        mu = jnp.mean(y, axis=1, keepdims=True)
        var = jnp.mean((y - mu) ** 2, axis=1, keepdims=True)
    y = params["gamma"][None] * (y - mu) / jnp.sqrt(var + EPS) + params["beta"][None]
    return jnp.einsum("oc,mct->mot", params["pw"], y)


def init_params(key, c_in, c_out, kernel_size):
    k1, k2 = jax.random.split(key)
    return dict(
        dw=(math.sqrt(2.0 / kernel_size)
            * jax.random.normal(k1, (kernel_size, c_in, 1))).astype(jnp.float32),
        alpha=jnp.full((1,), 0.25, jnp.float32),       # nn.PReLU() default
        gamma=jnp.ones((c_in, 1), jnp.float32),        # norm gamma
        beta=jnp.zeros((c_in, 1), jnp.float32),        # norm beta
        pw=(math.sqrt(2.0 / c_in)
            * jax.random.normal(k2, (c_out, c_in))).astype(jnp.float32),
    )


# --------------------------------------------------------------------------
if __name__ == "__main__":
    M, C, COUT, T = 2, 16, 32, 128
    KS = 3

    key = jax.random.PRNGKey(0)
    kp, kx = jax.random.split(key)
    params = init_params(kp, C, COUT, KS)
    x = jax.random.normal(kx, (M, C, T), dtype=jnp.float32)

    configs = [
        # causal TCN config (the one cRFConvTasNet uses): padding=(k-1)*d + Chomp
        dict(kernel_size=KS, stride=1, dilation=2, padding=(KS - 1) * 2,
             norm_type="gLN", causal=True),
        # non-causal 'same' config with channelwise LayerNorm
        dict(kernel_size=KS, stride=1, dilation=1, padding=1,
             norm_type="cLN", causal=False),
    ]

    for cfg in configs:
        fwd = jax.jit(functools.partial(depthwise_separable_conv, **cfg))
        out = jax.block_until_ready(fwd(x, params))
        ref = _reference(x, params, kernel_size=cfg["kernel_size"],
                         padding=cfg["padding"], dilation=cfg["dilation"],
                         norm_type=cfg["norm_type"], causal=cfg["causal"])
        assert out.shape == (M, COUT, T), out.shape
        assert bool(jnp.all(jnp.isfinite(out)))
        assert bool(jnp.allclose(out, ref, atol=1e-4, rtol=1e-4)), \
            float(jnp.max(jnp.abs(out - ref)))

    print("KERNEL_OK")
</pallas_src>

<mosaic_0001>
module attributes {stable_mosaic.version = 11 : i64} {
  func.func @_dsconv_kernel(%arg0: i32, %arg1: memref<1x16x128xf32, #tpu.memory_space<vmem>>, %arg2: memref<3x16x1xf32, #tpu.memory_space<vmem>>, %arg3: memref<1xf32, #tpu.memory_space<smem>>, %arg4: memref<16x1xf32, #tpu.memory_space<vmem>>, %arg5: memref<16x1xf32, #tpu.memory_space<vmem>>, %arg6: memref<32x16xf32, #tpu.memory_space<vmem>>, %arg7: memref<1x32x128xf32, #tpu.memory_space<vmem>>) attributes {dimension_semantics = [#tpu.dimension_semantics<parallel>], iteration_bounds = array<i64: 2>, scalar_prefetch = 0 : i64, scratch_operands = 0 : i64, tpu.core_type = #tpu.core_type<tc>, window_params = [{transform_indices = @transform_0, window_bounds = array<i64: 1, 16, 128>}, {pipeline_mode = #tpu.pipeline_mode<synchronous>, transform_indices = @transform_1, window_bounds = array<i64: 3, 16, 1>}, {transform_indices = @transform_2, window_bounds = array<i64: 1>}, {pipeline_mode = #tpu.pipeline_mode<synchronous>, transform_indices = @transform_3, window_bounds = array<i64: 16, 1>}, {pipeline_mode = #tpu.pipeline_mode<synchronous>, transform_indices = @transform_4, window_bounds = array<i64: 16, 1>}, {pipeline_mode = #tpu.pipeline_mode<synchronous>, transform_indices = @transform_5, window_bounds = array<i64: 32, 16>}, {transform_indices = @transform_6, window_bounds = array<i64: 1, 32, 128>}]} {
    %c0 = arith.constant 0 : index
    %c0_0 = arith.constant 0 : index
    %c0_1 = arith.constant 0 : index
    %0 = vector.load %arg1[%c0, %c0_0, %c0_1] : memref<1x16x128xf32, #tpu.memory_space<vmem>>, vector<1x16x128xf32>
    %1 = vector.shape_cast %0 : vector<1x16x128xf32> to vector<16x128xf32>
    %2 = tpu.iota {dimensions = array<i32: 1>} : vector<16x128xi32>
    %cst = arith.constant 0.000000e+00 : f32
    %3 = vector.broadcast %cst : f32 to vector<16x128xf32>
    %c0_2 = arith.constant 0 : index
    %c0_3 = arith.constant 0 : index
    %c0_4 = arith.constant 0 : index
    %4 = vector.load %arg2[%c0_2, %c0_3, %c0_4] : memref<3x16x1xf32, #tpu.memory_space<vmem>>, vector<1x16x1xf32>
    %5 = vector.shape_cast %4 : vector<1x16x1xf32> to vector<16x1xf32>
    %c4_i32 = arith.constant 4 : i32
    %6 = vector.broadcast %c4_i32 : i32 to vector<16x128xi32>
    %7 = arith.cmpi sge, %2, %6 : vector<16x128xi32>
    %c4_i32_5 = arith.constant 4 : i32
    %8 = tpu.dynamic_rotate %1 by %c4_i32_5 dim 1 : vector<16x128xf32>, i32 -> vector<16x128xf32>
    %cst_6 = arith.constant 0.000000e+00 : f32
    %9 = vector.broadcast %cst_6 : f32 to vector<16x128xf32>
    %10 = arith.select %7, %8, %9 : vector<16x128xi1>, vector<16x128xf32>
    %11 = vector.broadcast %5 : vector<16x1xf32> to vector<16x128xf32>
    %12 = arith.mulf %11, %10 : vector<16x128xf32>
    %13 = arith.addf %3, %12 : vector<16x128xf32>
    %c1 = arith.constant 1 : index
    %c0_7 = arith.constant 0 : index
    %c0_8 = arith.constant 0 : index
    %14 = vector.load %arg2[%c1, %c0_7, %c0_8] : memref<3x16x1xf32, #tpu.memory_space<vmem>>, vector<1x16x1xf32>
    %15 = vector.shape_cast %14 : vector<1x16x1xf32> to vector<16x1xf32>
    %c2_i32 = arith.constant 2 : i32
    %16 = vector.broadcast %c2_i32 : i32 to vector<16x128xi32>
    %17 = arith.cmpi sge, %2, %16 : vector<16x128xi32>
    %c2_i32_9 = arith.constant 2 : i32
    %18 = tpu.dynamic_rotate %1 by %c2_i32_9 dim 1 : vector<16x128xf32>, i32 -> vector<16x128xf32>
    %cst_10 = arith.constant 0.000000e+00 : f32
    %19 = vector.broadcast %cst_10 : f32 to vector<16x128xf32>
    %20 = arith.select %17, %18, %19 : vector<16x128xi1>, vector<16x128xf32>
    %21 = vector.broadcast %15 : vector<16x1xf32> to vector<16x128xf32>
    %22 = arith.mulf %21, %20 : vector<16x128xf32>
    %23 = arith.addf %13, %22 : vector<16x128xf32>
    %c2 = arith.constant 2 : index
    %c0_11 = arith.constant 0 : index
    %c0_12 = arith.constant 0 : index
    %24 = vector.load %arg2[%c2, %c0_11, %c0_12] : memref<3x16x1xf32, #tpu.memory_space<vmem>>, vector<1x16x1xf32>
    %25 = vector.shape_cast %24 : vector<1x16x1xf32> to vector<16x1xf32>
    %26 = vector.broadcast %25 : vector<16x1xf32> to vector<16x128xf32>
    %27 = arith.mulf %26, %1 : vector<16x128xf32>
    %28 = arith.addf %23, %27 : vector<16x128xf32>
    %c0_13 = arith.constant 0 : index
    %29 = memref.load %arg3[%c0_13] : memref<1xf32, #tpu.memory_space<smem>>
    %cst_14 = arith.constant 0.000000e+00 : f32
    %30 = vector.broadcast %cst_14 : f32 to vector<16x128xf32>
    %31 = arith.cmpf oge, %28, %30 : vector<16x128xf32>
    %32 = vector.broadcast %29 : f32 to vector<16x128xf32>
    %33 = arith.mulf %32, %28 : vector<16x128xf32>
    %34 = arith.select %31, %28, %33 : vector<16x128xi1>, vector<16x128xf32>
    %c0_15 = arith.constant 0 : index
    %c0_16 = arith.constant 0 : index
    %35 = vector.load %arg4[%c0_15, %c0_16] : memref<16x1xf32, #tpu.memory_space<vmem>>, vector<16x1xf32>
    %c0_17 = arith.constant 0 : index
    %c0_18 = arith.constant 0 : index
    %36 = vector.load %arg5[%c0_17, %c0_18] : memref<16x1xf32, #tpu.memory_space<vmem>>, vector<16x1xf32>
    %37 = vector.shape_cast %34 : vector<16x128xf32> to vector<1x16x128xf32>
    %cst_19 = arith.constant dense<0.000000e+00> : vector<1xf32>
    %38 = vector.multi_reduction <add>, %37, %cst_19 [1, 2] : vector<1x16x128xf32> to vector<1xf32>
    %39 = vector.shape_cast %38 : vector<1xf32> to vector<1x1x1xf32>
    %40 = vector.extract %39[0, 0, 0] : f32 from vector<1x1x1xf32>
    %41 = vector.broadcast %40 : f32 to vector<1x1xf32>
    %cst_20 = arith.constant 2.048000e+03 : f32
    %42 = vector.broadcast %cst_20 : f32 to vector<1x1xf32>
    %43 = arith.divf %41, %42 : vector<1x1xf32>
    %44 = vector.broadcast %43 : vector<1x1xf32> to vector<16x128xf32>
    %45 = arith.subf %34, %44 : vector<16x128xf32>
    %46 = arith.mulf %45, %45 : vector<16x128xf32>
    %47 = vector.shape_cast %46 : vector<16x128xf32> to vector<1x16x128xf32>
    %cst_21 = arith.constant dense<0.000000e+00> : vector<1xf32>
    %48 = vector.multi_reduction <add>, %47, %cst_21 [1, 2] : vector<1x16x128xf32> to vector<1xf32>
    %49 = vector.shape_cast %48 : vector<1xf32> to vector<1x1x1xf32>
    %50 = vector.extract %49[0, 0, 0] : f32 from vector<1x1x1xf32>
    %51 = vector.broadcast %50 : f32 to vector<1x1xf32>
    %cst_22 = arith.constant 2.048000e+03 : f32
    %52 = vector.broadcast %cst_22 : f32 to vector<1x1xf32>
    %53 = arith.divf %51, %52 : vector<1x1xf32>
    %54 = vector.broadcast %43 : vector<1x1xf32> to vector<16x128xf32>
    %55 = arith.subf %34, %54 : vector<16x128xf32>
    %56 = vector.broadcast %35 : vector<16x1xf32> to vector<16x128xf32>
    %57 = arith.mulf %56, %55 : vector<16x128xf32>
    %cst_23 = arith.constant 9.99999982E-14 : f32
    %58 = vector.broadcast %cst_23 : f32 to vector<1x1xf32>
    %59 = arith.addf %53, %58 : vector<1x1xf32>
    %60 = math.rsqrt %59 : vector<1x1xf32>
    %61 = vector.broadcast %60 : vector<1x1xf32> to vector<16x128xf32>
    %62 = arith.mulf %57, %61 : vector<16x128xf32>
    %63 = vector.broadcast %36 : vector<16x1xf32> to vector<16x128xf32>
    %64 = arith.addf %62, %63 : vector<16x128xf32>
    %c0_24 = arith.constant 0 : index
    %c0_25 = arith.constant 0 : index
    %65 = vector.load %arg6[%c0_24, %c0_25] : memref<32x16xf32, #tpu.memory_space<vmem>>, vector<32x16xf32>
    %cst_26 = arith.constant dense<0.000000e+00> : vector<32x128xf32>
    %66 = tpu.matmul %65, %64, %cst_26 {dimension_numbers = #tpu.dot_dimension_numbers<[1], [0], [0], [1], [0, 0, 1, 1], [], []>} : vector<32x16xf32>, vector<16x128xf32>, vector<32x128xf32> -> vector<32x128xf32>
    %c0_27 = arith.constant 0 : index
    %c0_28 = arith.constant 0 : index
    %c0_29 = arith.constant 0 : index
    %67 = vector.load %arg7[%c0_27, %c0_28, %c0_29] : memref<1x32x128xf32, #tpu.memory_space<vmem>>, vector<1x32x128xf32>
    %68 = vector.shape_cast %67 : vector<1x32x128xf32> to vector<32x128xf32>
    %69 = vector.shape_cast %66 : vector<32x128xf32> to vector<1x32x128xf32>
    tpu.vector_store %arg7[%c0_27, %c0_28, %c0_29], %69 {strides = array<i32>} : memref<1x32x128xf32, #tpu.memory_space<vmem>>, vector<1x32x128xf32>,
    return
  }
  func.func @transform_0(%arg0: i32) -> (i32, i32, i32) {
    %c0_i32 = arith.constant 0 : i32
    %c0_i32_0 = arith.constant 0 : i32
    %c0_i32_1 = arith.constant 0 : i32
    return %arg0, %c0_i32, %c0_i32_0 : i32, i32, i32
  }
  func.func @transform_1(%arg0: i32) -> (i32, i32, i32) {
    %c0_i32 = arith.constant 0 : i32
    %c0_i32_0 = arith.constant 0 : i32
    %c0_i32_1 = arith.constant 0 : i32
    %c0_i32_2 = arith.constant 0 : i32
    return %c0_i32, %c0_i32_0, %c0_i32_1 : i32, i32, i32
  }
  func.func @transform_2(%arg0: i32) -> i32 {
    %c0_i32 = arith.constant 0 : i32
    %c0_i32_0 = arith.constant 0 : i32
    return %c0_i32 : i32
  }
  func.func @transform_3(%arg0: i32) -> (i32, i32) {
    %c0_i32 = arith.constant 0 : i32
    %c0_i32_0 = arith.constant 0 : i32
    %c0_i32_1 = arith.constant 0 : i32
    return %c0_i32, %c0_i32_0 : i32, i32
  }
  func.func @transform_4(%arg0: i32) -> (i32, i32) {
    %c0_i32 = arith.constant 0 : i32
    %c0_i32_0 = arith.constant 0 : i32
    %c0_i32_1 = arith.constant 0 : i32
    return %c0_i32, %c0_i32_0 : i32, i32
  }
  func.func @transform_5(%arg0: i32) -> (i32, i32) {
    %c0_i32 = arith.constant 0 : i32
    %c0_i32_0 = arith.constant 0 : i32
    %c0_i32_1 = arith.constant 0 : i32
    return %c0_i32, %c0_i32_0 : i32, i32
  }
  func.func @transform_6(%arg0: i32) -> (i32, i32, i32) {
    %c0_i32 = arith.constant 0 : i32
    %c0_i32_0 = arith.constant 0 : i32
    %c0_i32_1 = arith.constant 0 : i32
    return %arg0, %c0_i32, %c0_i32_0 : i32, i32, i32
  }
}

</mosaic_0001>

<bundles_post_ra>
// kernel: depthwise_separable_conv.1
= control target key start
LH: loop header
LB: loop body
LE: loop exit
PB: predicated region body
PF: predicated region fallthrough
CT: control target
= control target key end

     0   :  { %s923_s0 = inlined_call_operand.vmem [shape: f32[2,16,128], index: 0, kind: input, shape index: {}]   ;;  %s924_s1 = inlined_call_operand.vmem [shape: f32[3,16,1], index: 1, kind: input, shape index: {}]   ;;  %s925_s2 = inlined_call_operand.<no memory space> [shape: f32[1], index: 2, kind: input, shape index: {}]   ;;  %s926_s3 = inlined_call_operand.vmem [shape: f32[16,1], index: 3, kind: input, shape index: {}]   ;;  %s927_s4 = inlined_call_operand.vmem [shape: f32[16,1], index: 4, kind: input, shape index: {}]   ;;  %s928_s5 = inlined_call_operand.vmem [shape: f32[32,16], index: 5, kind: input, shape index: {}]   ;;  %s929_s6 = inlined_call_operand.hbm [shape: f32[2,32,128], index: 6, kind: output, shape index: {}]  }
   0x1   :  { %11 = sst [smem:[#allocation2]] %s925_s2 }
   0x2   :  { %12 = vsyncpa [#allocation4], 0 }
   0x3   :  { %14 = vsyncpa [#allocation4 + $0x1], 0  ;;  %s774_s23 = smov 0   ;;  %s776_s24 = smov 0  }
   0x4   :  { %s778_s25 = smov 0   ;;  %s780_s26 = smov 0  }
   0x5 LB: > { %s795_s2 = sadd.s32 4294967295, %s728_s26   ;;  %s570_s27 = sadd.s32 4294967294, %s728_s26   ;;  %s728_s26 = sphi %s780_s26, %s935_s26   ;;  %s724_s25 = sphi %s778_s25, %s934_s25   ;;  %s720_s24 = sphi %s776_s24, %s933_s24   ;;  %s716_s23 = sphi %s774_s23, %s932_s23  }
   0x6   : > { %s799_s28 = sadd.s32 1, %s728_s26   ;;  %s158_s29 = sadd.s32 1, %s724_s25 }
   0x7   : > { %s155_s30 = ssub.s32 %s728_s26, %s799_s28  ;;  %p168_p0 = scmp.ne.s32.totalorder %s724_s25, %s720_s24 }
   0x8   : > { %p156_p1 = scmp.eq.s32.totalorder %s155_s30, 0  ;;  %p169_p2 = scmp.eq.s32.totalorder %s795_s2, 1 }
   0x9   : > { %p174_p3 = scmp.ne.s32.totalorder %s720_s24, %s716_s23  ;;  %p175_p4 = scmp.eq.s32.totalorder %s570_s27, 1 }
   0xa   : > { %s810_s7 = scalar_select %p156_p1, %s724_s25, %s158_s29  }
   0xb   : > { %p812_p5 = por %p169_p2, %p168_p0  ;;  %p816_p6 = por %p175_p4, %p174_p3 }
   0xc   : > { %p573_p7 = scmp.ge.s32.totalorder %s728_s26, 1  ;;  %p216_p8 = scmp.lt.s32.totalorder %s728_s26, 3 }
   0xe   : > { %p217_p9 = pnand %p573_p7, %p216_p8 }
   0xf   : > { %v577_v0 = vld [vmem:[%s924_s1 + $0x10] sm:$0xff] (!%p217_p9)  ;;  %v255_v1 = vld [vmem:[%s924_s1] sm:$0xff] (!%p217_p9)  ;;  %p246_p10 = scmp.lt.s32.totalorder (!%p217_p9), %s795_s2, 1  ;;  %v730_v2 = vmov (!%p217_p9), 0   ;;  %v578_v3 = vld [vmem:[%s924_s1 + $0x18] sm:$0xff] (!%p217_p9)  ;;  %s731_s11 = smov (!%p217_p9), 4   ;;  %v253_v13 = vlaneseq (!%p217_p9) }
  0x10   : > { %220 = sbr.rel (%p217_p9) target bundleno = 844 (0x34c), region = 44  ;;  %663 = vset.pattern.permute.xlu1 (!%p217_p9), %v730_v2  ;;  %662 = vset.pattern.permute.xlu0 (!%p217_p9), %v730_v2  ;;  %v256_v4 = vld [vmem:[%s924_s1 + $0x8] sm:$0xff] (!%p217_p9)  ;;  %v579_v6 = vld [vmem:[%s924_s1 + $0x20] sm:$0xff] (!%p217_p9)  ;;  %s732_s12 = smov (!%p217_p9), 2   ;;  %vm392_vm4 = vcmask (!%p217_p9), 130048   ;;  %v390_v60 = vld [vmem:[%s928_s5 + $0x10] sm:$0xff] (!%p217_p9) }
  0x11   : > { %290 = vperm.xlu1 (!%p217_p9), %663, %v577_v0   ;;  %266 = vperm.xlu0 (!%p217_p9), %662, %v255_v1   ;;  %v580_v5 = vld [vmem:[%s924_s1 + $0x28] sm:$0xff] (!%p217_p9)  ;;  %v254_v16 = vand.u32 (!%p217_p9), 127, %v253_v13  ;;  %s319_s13 = sld [smem:[#allocation2]] (!%p217_p9)  ;;  %v327_v41 = vld [vmem:[%s926_s3] sm:$0xff] (!%p217_p9)  ;;  %s243_s16 = sand.u32 (!%p217_p9), 1, %s720_s24  }
  0x12   : > { %v329_v42 = vld [vmem:[%s927_s4] sm:$0xff] (!%p217_p9)  ;;  %v328_v57 = vld [vmem:[%s926_s3 + $0x8] sm:$0xff] (!%p217_p9)  ;;  %605 = vmatprep.mubr.msk.f32.mxu1 (!%p217_p9), %vm392_vm4, %v390_v60  ;;  %s574_s17 = sshll.u32 (!%p217_p9), %s243_s16, 5  ;;  %s591_s20 = sshll.u32 (!%p217_p9), %s795_s2, 9 }
  0x13   : > { %vm257_vm0 = vcmp.ge.s32.totalorder (!%p217_p9), %v254_v16, 4  ;;  %vm281_vm1 = vcmp.ge.s32.totalorder (!%p217_p9), %v254_v16, 2  ;;  %v330_v58 = vld [vmem:[%s927_s4 + $0x8] sm:$0xff] (!%p217_p9)  ;;  %v388_v59 = vld [vmem:[%s928_s5] sm:$0xff] (!%p217_p9)  ;;  %s880_s27 = scalar_lea.hbm (!%p217_p9), %s929_s6, %s591_s20  ;;  %s882_s29 = scalar_lea.sflag (!%p217_p9), [#allocation4], %s243_s16 }
  0x14   : > { %602 = vmatprep.mubr.msk.f32.mxu0 (!%p217_p9), %vm392_vm4, %v388_v59  ;;  %s733_s30 = smov (!%p217_p9), [#allocation3]  }
  0x15   : > { %295 = vperm.xlu1 (!%p217_p9), %663, %v578_v3   ;;  %271 = vperm.xlu0 (!%p217_p9), %662, %v256_v4  }
  0x17   : > { %s247_s14 = scalar_select %p246_p10, %s795_s2, 1  ;;  %v322_v33 = vstv %s319_s13 }
  0x19   : > { %s590_s19 = sshll.u32 %s247_s14, 4  ;;  %312 = vperm.xlu1 %663, %v580_v5   ;;  %307 = vperm.xlu0 %662, %v579_v6  }
  0x1a   : > { %s250_s10 = scalar_lea.vmem %s923_s0, %s590_s19 }
  0x1b   : > { %v252_v7 = vld [vmem:[%s250_s10 + $0x8] sm:$0xff]  ;;  %v251_v8 = vld [vmem:[%s250_s10] sm:$0xff]  ;;  %s670_s10 = sshll.u32 %s733_s30, 4  ;;  %s671_s10 = int_to_ptr.vmem [resolvable:$false] %s670_s10 }
  0x1d   : > { %260 = vrot.lane.b32.xlu1 %v252_v7, %s731_s11  ;;  %258 = vrot.lane.b32.xlu0 %v251_v8, %s731_s11 }
  0x21   : > { %284 = vrot.lane.b32.xlu1 %v252_v7, %s732_s12  ;;  %282 = vrot.lane.b32.xlu0 %v251_v8, %s732_s12 }
  0x90   : > { %v291_v9 = vpop.permute.xlu1 %290  ;;  %v267_v10 = vpop.permute.xlu0 %266 }
  0x94   : > { %v296_v11 = vpop.permute.xlu1 %295  ;;  %v272_v12 = vpop.permute.xlu0 %271 }
  0x98   : > { %v313_v14 = vpop.permute.xlu1 %312  ;;  %v308_v15 = vpop.permute.xlu0 %307 }
  0x99   : > { %v316_v29 = vmul.f32 %v313_v14, %v252_v7  ;;  %v315_v30 = vmul.f32 %v308_v15, %v251_v8 }
  0x9c   : > { %v261_v17 = vpop.permute.xlu1 %260  ;;  %v259_v18 = vpop.permute.xlu0 %258 }
  0x9d   : > { %v263_v19 = vsel %vm257_vm0, %v261_v17, 0.0  ;;  %v262_v20 = vsel %vm257_vm0, %v259_v18, 0.0 }
  0x9e   : > { %v275_v25 = vmul.f32 %v272_v12, %v263_v19  ;;  %v274_v26 = vmul.f32 %v267_v10, %v262_v20  ;;  %v389_v19 = vld [vmem:[%s928_s5 + $0x8] sm:$0xff]  ;;  %v391_v20 = vld [vmem:[%s928_s5 + $0x18] sm:$0xff] }
  0xa0   : > { %v285_v21 = vpop.permute.xlu1 %284  ;;  %v283_v22 = vpop.permute.xlu0 %282 }
  0xa1   : > { %v287_v23 = vsel %vm281_vm1, %v285_v21, 0.0  ;;  %v286_v24 = vsel %vm281_vm1, %v283_v22, 0.0 }
  0xa2   : > { %v299_v27 = vmul.f32 %v296_v11, %v287_v23  ;;  %v298_v28 = vmul.f32 %v291_v9, %v286_v24 }
  0xa4   : > { %v301_v31 = vadd.f32 %v299_v27, %v275_v25  ;;  %v300_v32 = vadd.f32 %v298_v28, %v274_v26 }
  0xa6   : > { %v318_v34 = vadd.f32 %v316_v29, %v301_v31  ;;  %v317_v35 = vadd.f32 %v315_v30, %v300_v32 }
  0xa8   : > { %vm320_vm2 = vcmp.ge.f32.partialorder %v317_v35, 0.0  ;;  %vm321_vm3 = vcmp.ge.f32.partialorder %v318_v34, 0.0  ;;  %v323_v36 = vmul.f32 %v322_v33, %v317_v35  ;;  %v324_v37 = vmul.f32 %v322_v33, %v318_v34 }
  0xaa   : > { %v325_v38 = vsel %vm320_vm2, %v317_v35, %v323_v36  ;;  %v326_v39 = vsel %vm321_vm3, %v318_v34, %v324_v37 }
  0xab   : > { %v331_v40 = vadd.f32 %v326_v39, %v325_v38 }
  0xad   : > { %332 = vadd.xlane.f32.xlu0 %v331_v40 }
  0xc3   : > { %362 = vperm.xlu0 %662, %v327_v41  }
  0xc7   : > { %378 = vperm.xlu0 %662, %v329_v42  }
 0x13a   : > { %v333_v43 = vpop.xlane.xlu0 %332 }
 0x13b   : > { %v334_v44 = vrot.slane %v333_v43, 4 }
 0x13d   : > { %v335_v45 = vadd.f32 %v334_v44, %v333_v43 }
 0x13f   : > { %v336_v46 = vrot.slane %v335_v45, 2 }
 0x141   : > { %v337_v47 = vadd.f32 %v336_v46, %v335_v45 }
 0x142   : > { %v363_v7 = vpop.permute.xlu0 %362 }
 0x143   : > { %v338_v48 = vrot.slane %v337_v47, 1 }
 0x145   : > { %v339_v49 = vadd.f32 %v338_v48, %v337_v47 }
 0x146   : > { %v379_v14 = vpop.permute.xlu0 %378 }
 0x147   : > { %614 = vpush %v339_v49 }
 0x178   : > { %s615_s18 = spop %614 }
 0x179   : > { %v341_v50 = vstv %s615_s18  ;;  %s245_s18 = scalar_lea.vmem [#allocation3], %s574_s17 }
 0x17a   : > { %v343_v51 = vmul.f32 0.00048828125, %v341_v50  ;;  %s508_s19 = sshll.u32 %s245_s18, 4  ;;  %s875_s19 = int_to_ptr.vmem [resolvable:$true] %s508_s19 }
 0x17b   : > { %s666_s2 = scalar_lea.vmem %s875_s19, 512  ;;  %p673_p0 = scmp.lt.s32.totalorder %s875_s19, %s671_s10 }
 0x17c   : > { %v344_v52 = vsub.f32 %v325_v38, %v343_v51  ;;  %v345_v53 = vsub.f32 %v326_v39, %v343_v51  ;;  %p667_p11 = scmp.ne.s32.totalorder %s875_s19, %s666_s2 }
 0x17e   : > { %v346_v54 = vmul.f32 %v344_v52, %v344_v52  ;;  %v347_v55 = vmul.f32 %v345_v53, %v345_v53  ;;  %v370_v9 = vmul.f32 %v363_v7, %v344_v52  ;;  %p668_p12 = pnand %p667_p11, %p812_p5 }
 0x180   : > { %v348_v56 = vadd.f32 %v347_v55, %v346_v54  ;;  %p669_p13 = pneg %p668_p12 }
 0x182   : > { %349 = vadd.xlane.f32.xlu1 %v348_v56 }
 0x193   : > { %367 = vperm.xlu1 %663, %v328_v57  }
 0x197   : > { %383 = vperm.xlu1 %663, %v330_v58  }
 0x20f   : > { %v350_v61 = vpop.xlane.xlu1 %349 }
 0x210   : > { %v351_v62 = vrot.slane %v350_v61, 4 }
 0x212   : > { %v352_v63 = vadd.f32 %v351_v62, %v350_v61 }
 0x213   : > { %v368_v8 = vpop.permute.xlu1 %367 }
 0x214   : > { %v353_v0 = vrot.slane %v352_v63, 2  ;;  %v371_v10 = vmul.f32 %v368_v8, %v345_v53 }
 0x216   : > { %v354_v1 = vadd.f32 %v353_v0, %v352_v63 }
 0x217   : > { %v384_v15 = vpop.permute.xlu1 %383 }
 0x218   : > { %v355_v2 = vrot.slane %v354_v1, 1 }
 0x21a   : > { %v356_v3 = vadd.f32 %v355_v2, %v354_v1 }
 0x21c   : > { %616 = vpush %v356_v3 }
 0x24d   : > { %s617_s11 = spop %616 }
 0x24e   : > { %v358_v4 = vstv %s617_s11  ;;  %s672_s11 = scalar_lea.vmem %s671_s10, 1024 }
 0x24f   : > { %v359_v5 = vmul.f32 0.00048828125, %v358_v4  ;;  %p674_p1 = scmp.lt.s32.totalorder %s672_s11, %s666_s2 }
 0x251   : > { %v372_v6 = vadd.f32 1e-13, %v359_v5  ;;  %p675_p2 = por %p674_p1, %p673_p0 }
 0x253   : > { %664 = vrsqrt.f32 %v372_v6  ;;  %p676_p3 = pnand %p675_p2, %p669_p13 }
 0x25d   : > { %v665_v11 = vpop.eup %664 }
 0x25e   : > { %v374_v12 = vmul.f32 %v665_v11, %v370_v9  ;;  %v375_v13 = vmul.f32 %v665_v11, %v371_v10 }
 0x260   : > { %v386_v16 = vadd.f32 %v379_v14, %v374_v12  ;;  %v387_v17 = vadd.f32 %v384_v15, %v375_v13 }
 0x262   : > { %v608_v18 = vpack.c.bf16 %v387_v17, %v386_v16 }
 0x264   : > { %609 = vmatprep.subr.bf16.mxu0 %v608_v18  ;;  %612 = vmatprep.subr.bf16.mxu1 %v608_v18 }
 0x265   : > { %611 = vmatpush3.bf16.msra.mxu0 %v608_v18  ;;  %613 = vmatpush3.bf16.msra.mxu1 %v608_v18 }
 0x268   : > { %603 = vmatmul.mubr.msk.f32.vlgmr.msra.gmra.mrb[0].mxu0 %vm392_vm4, %v389_v19  ;;  %606 = vmatmul.mubr.msk.f32.vlgmr.msra.gmra.mrb[0].mxu1 %vm392_vm4, %v391_v20 }
 0x33b   : > { %v604_v21 = vpop.f32.mrb[0].mxu0  ;;  %v607_v22 = vpop.f32.mrb[0].mxu1 }
 0x33c   : > { %491 = vst [vmem:[%s245_s18 + $0x8] sm:$0xff] %v604_v21  ;;  %493 = vst [vmem:[%s245_s18 + $0x18] sm:$0xff] %v607_v22  ;;  %v471_v23 = vpop.f32.mrb[1].mxu0  ;;  %v481_v24 = vpop.f32.mrb[1].mxu1 }
 0x33d   : > { %490 = vst [vmem:[%s245_s18] sm:$0xff] %v471_v23  ;;  %492 = vst [vmem:[%s245_s18 + $0x10] sm:$0xff] %v481_v24 }
 0x33e   : > { %679 = shalt.err (!%p676_p3)
}
 0x33f   : > { %s680_s12 = scalar_lea.hbm %s880_s27, 512  ;;  %s684_s15 = scalar_lea.hbm %s929_s6, 1024 }
 0x340   : > { %p681_p4 = scmp.ne.s32.totalorder %s880_s27, %s680_s12  ;;  %p685_p9 = scmp.lt.u32.totalorder %s880_s27, %s929_s6 }
 0x341   : > { %p686_p10 = scmp.lt.u32.totalorder %s684_s15, %s680_s12  ;;  %p688_p12 = scmp.lt.u32.totalorder %s680_s12, %s880_s27 }
 0x342   : > { %p682_p7 = pnand %p681_p4, %p812_p5 }
 0x343   : > { %p687_p11 = por %p686_p10, %p685_p9 }
 0x344   : > { %p683_p8 = pneg %p682_p7 }
 0x345   : > { %p689_p13 = por %p688_p12, %p687_p11 }
 0x347   : > { %p690_p0 = pnand %p689_p13, %p683_p8 }
 0x349   : > { %693 = shalt.err (!%p690_p0)
}
 0x34a   : > { %s734_s18 = smov 128   ;;  %s735_s20 = smov 8  }
 0x34b   : > { %618 = dma.vmem_to_hbm [thread:$0]  (%p812_p5), %s875_s19, 512, %s880_s27, %s882_s29, %s734_s18, %s734_s18, %s735_s20  }
 0x34c PF: > { %p624_p1 = scmp.ge.s32.totalorder %s728_s26, 2  ;;  %s523_s21 = sand.u32 1, %s716_s23  }
 0x34d   : > { %s524_s22 = scalar_lea.sflag [#allocation4], %s523_s21 }
 0x34e   : > { %p621_p2 = pnand %p624_p1, %p816_p6 }
 0x350   : > { %711 = dma.done.wait (!%p621_p2), %s524_s22, 512  }
 0x351   : > { %713 = vsyncadd (!%p621_p2), %s524_s22, 4294966784  ;;  %p17_p3 = scmp.ge.s32.totalorder %s799_s28, 4   ;;  %s932_s23 = smov %s720_s24 }
 0x352   : > { %s933_s24 = smov %s724_s25  ;;  %s934_s25 = smov %s810_s7 }
 0x353   : > { %s935_s26 = smov %s799_s28  ;;  %19 = sbr.rel (!%p17_p3) target bundleno = 5 (0x5), region = 81 }
 0x35a   :  { %529 = vsyncpa [#allocation4], 1 }
 0x35b   :  { %531 = vsyncpa [#allocation4 + $0x1], 1 }

</bundles_post_ra>
